<compile_context>
chip_gen: v7x
topology: tpu7x:2x2x1
jax: 0.10.0
libtpu: 0.0.40
codegen_flags: <defaults>
</compile_context>

<pallas_src>
import functools

import jax
import jax.numpy as jnp
from jax.experimental import pallas as pl
from jax.experimental.pallas import tpu as pltpu

_LANES = 128
# 8192 rows * 128 lanes * 4 B = 4 MiB per f32 input per pipeline buffer
# (16 MiB total with double-buffered logits + targets). Multiple of 32 so
# f32 / bf16 / int8 sublane tiling constraints are all satisfied when grid > 1.
_MAX_TILE_ROWS = 8192


def _combo_sums_kernel(x_ref, t_ref, o_ref, *, steps, tile_rows, n_valid,
                       needs_mask):
    """Accumulate per-lane partials of [sum(p*t), sum(p+t), sum(bce)].

    x_ref, t_ref : (tile_rows, 128) blocks of logits / targets (native dtype)
    o_ref        : (1, 3, 128) f32 output block, resident across the inner
                   (reduction) grid axis — doubles as the accumulator.
    """
    s = pl.program_id(1)

    @pl.when(s == 0)
    def _init():
        o_ref[...] = jnp.zeros_like(o_ref)

    x = x_ref[...].astype(jnp.float32)
    t = t_ref[...].astype(jnp.float32)

    # Logit-space formulation sharing a single exp per element:
    #   e   = exp(-|x|)
    #   p   = sigmoid(x) = 1/(1+e)  (x >= 0)   or   e/(1+e)  (x < 0)
    #   bce = log(1+e) + max(x, 0) - x*t     (BCE-with-logits; matches
    #         PyTorch's sigmoid + binary_cross_entropy except it avoids the
    #         -100 log clamp / log(1-p) cancellation for |x| >~ 17)
    e = jnp.exp(-jnp.abs(x))
    r = pl.reciprocal(1.0 + e, approx=False)
    p = jnp.where(x >= 0.0, r, e * r)
    bce = jnp.log(1.0 + e) + jnp.maximum(x, 0.0) - x * t

    inter = p * t
    p_plus_t = p + t

    if needs_mask:
        # Exact element-count mask. Covers: the (<128-element) lane padding,
        # a ragged final row tile (Pallas-padded block reads are unspecified),
        # and the clamped duplicate tile fed to a core that runs past the last
        # real tile when the megacore split is uneven.
        gid = pl.program_id(0) * steps + s
        base = gid * (tile_rows * _LANES)
        ridx = jax.lax.broadcasted_iota(jnp.int32, x.shape, 0)
        lidx = jax.lax.broadcasted_iota(jnp.int32, x.shape, 1)
        valid = (base + ridx * _LANES + lidx) < n_valid
        zero = jnp.zeros_like(x)
        inter = jnp.where(valid, inter, zero)
        p_plus_t = jnp.where(valid, p_plus_t, zero)
        bce = jnp.where(valid, bce, zero)

    # Cheap sublane reduce per step; the cross-lane reduction of the tiny
    # (nsplit, 3, 128) result happens once, in plain JAX, in the wrapper.
    o_ref[0, 0:1, :] += jnp.sum(inter, axis=0, keepdims=True)
    o_ref[0, 1:2, :] += jnp.sum(p_plus_t, axis=0, keepdims=True)
    o_ref[0, 2:3, :] += jnp.sum(bce, axis=0, keepdims=True)


def _combo_sums(logits, targets):
    n = logits.size
    x = logits.reshape(-1)
    t = targets.reshape(-1)
    # Stream in native dtype (cast to f32 inside the kernel). Only bool gets a
    # narrow int8 cast so Pallas sees a numeric block dtype.
    if x.dtype == jnp.bool_:
        x = x.astype(jnp.int8)
    if t.dtype == jnp.bool_:
        t = t.astype(jnp.int8)

    rows = pl.cdiv(n, _LANES)
    pad = rows * _LANES - n
    if pad:
        # TODO(synk): only the sub-128-element ragged tail pays a pad pass now;
        # padded values are excluded exactly by the in-kernel mask.
        x = jnp.pad(x, (0, pad))
        t = jnp.pad(t, (0, pad))
    x = x.reshape(rows, _LANES)   # contiguous reshape: free bitcast, no copy
    t = t.reshape(rows, _LANES)

    # Largest tile that fits comfortably in scoped VMEM. If the whole array is
    # one tile, use the exact row count (block == full array dims, so no
    # sublane-multiple rounding needed for any dtype); otherwise
    # _MAX_TILE_ROWS (multiple of 32) satisfies f32 / bf16 / int8 tiling.
    tile_rows = rows if rows <= _MAX_TILE_ROWS else _MAX_TILE_ROWS
    total_tiles = pl.cdiv(rows, tile_rows)

    # Megacore split: leading "parallel" axis of size 2 so v7x's two
    # TensorCores stream disjoint halves (a plain sequential outer loop on
    # single-core v5e / v6e).
    nsplit = 2 if total_tiles >= 2 else 1
    steps = pl.cdiv(total_tiles, nsplit)
    needs_mask = (nsplit * steps * tile_rows * _LANES) != n

    if nsplit * steps == total_tiles:
        in_index = lambda c, s: (c * steps + s, 0)
    else:
        last_tile = total_tiles - 1
        # Clamp the DMA to the last real tile; the in-kernel mask zeroes the
        # duplicated contribution.
        in_index = lambda c, s: (jnp.minimum(c * steps + s, last_tile), 0)
    in_spec = pl.BlockSpec((tile_rows, _LANES), in_index)

    kernel = functools.partial(
        _combo_sums_kernel, steps=steps, tile_rows=tile_rows, n_valid=n,
        needs_mask=needs_mask)

    partials = pl.pallas_call(
        kernel,
        out_shape=jax.ShapeDtypeStruct((nsplit, 3, _LANES), jnp.float32),
        grid=(nsplit, steps),
        in_specs=[in_spec, in_spec],
        out_specs=pl.BlockSpec((1, 3, _LANES), lambda c, s: (c, 0, 0)),
        compiler_params=pltpu.CompilerParams(
            dimension_semantics=("parallel", "arbitrary"),
            vmem_limit_bytes=40 << 20),
    )(x, t)

    sums = jnp.sum(partials, axis=(0, 2))   # (3,) = [inter, p_sum + t_sum, bce_sum]
    return sums, n


@functools.partial(jax.jit, static_argnames=("alpha", "gamma", "smooth"))
def combo_loss(inputs, targets, alpha=0.8, gamma=2, smooth=1):
    """JAX/Pallas equivalent of ComboLoss.forward (BCE + Dice + Focal)."""
    sums, n = _combo_sums(inputs, targets)
    intersection, pt_sum, bce_sum = sums[0], sums[1], sums[2]

    dice_loss = 1.0 - (2.0 * intersection + smooth) / (pt_sum + smooth)
    bce = bce_sum / jnp.float32(n)                       # reduction='mean'
    bce_exp = jnp.exp(-bce)
    focal_loss = alpha * (1.0 - bce_exp) ** gamma * bce
    return bce + dice_loss + focal_loss


def _combo_loss_ref(inputs, targets, alpha=0.8, gamma=2, smooth=1):
    """Pure-JAX mirror of the PyTorch module (sigmoid + clamped-log BCE)."""
    p = jax.nn.sigmoid(inputs.astype(jnp.float32)).reshape(-1)
    t = targets.astype(jnp.float32).reshape(-1)
    intersection = jnp.sum(p * t)
    dice_loss = 1.0 - (2.0 * intersection + smooth) / (jnp.sum(p) + jnp.sum(t) + smooth)
    log_p = jnp.maximum(jnp.log(p), -100.0)
    log_1mp = jnp.maximum(jnp.log(1.0 - p), -100.0)
    bce = jnp.mean(-(t * log_p + (1.0 - t) * log_1mp))
    focal_loss = alpha * (1.0 - jnp.exp(-bce)) ** gamma * bce
    return bce + dice_loss + focal_loss


if __name__ == "__main__":
    key = jax.random.PRNGKey(0)
    k1, k2, k3, k4 = jax.random.split(key, 4)

    # NCHW segmentation logits / masks (n = 2048: lane-aligned zero-copy path).
    x = jax.random.normal(k1, (2, 4, 16, 16), dtype=jnp.float32)
    targets = jax.random.bernoulli(k2, 0.5, (2, 4, 16, 16)).astype(jnp.float32)

    loss = jax.block_until_ready(combo_loss(x, targets))
    ref = _combo_loss_ref(x, targets)
    assert jnp.isfinite(loss), loss
    assert jnp.allclose(loss, ref, rtol=1e-5, atol=1e-5), (loss, ref)

    # Ragged shape (n = 1155, not a multiple of 128): exercises the in-kernel
    # element-count mask path.
    x2 = jax.random.normal(k3, (3, 5, 7, 11), dtype=jnp.float32)
    t2 = jax.random.bernoulli(k4, 0.3, (3, 5, 7, 11)).astype(jnp.float32)
    loss2 = jax.block_until_ready(combo_loss(x2, t2))
    ref2 = _combo_loss_ref(x2, t2)
    assert jnp.isfinite(loss2), loss2
    assert jnp.allclose(loss2, ref2, rtol=1e-5, atol=1e-5), (loss2, ref2)

    print("KERNEL_OK")
</pallas_src>

<mosaic_0001>
module attributes {stable_mosaic.version = 11 : i64} {
  func.func @_combo_sums_kernel(%arg0: i32, %arg1: i32, %arg2: memref<16x128xf32, #tpu.memory_space<vmem>>, %arg3: memref<16x128xf32, #tpu.memory_space<vmem>>, %arg4: memref<1x3x128xf32, #tpu.memory_space<vmem>>) attributes {dimension_semantics = [#tpu.dimension_semantics<parallel>, #tpu.dimension_semantics<arbitrary>], iteration_bounds = array<i64: 1, 1>, scalar_prefetch = 0 : i64, scratch_operands = 0 : i64, tpu.core_type = #tpu.core_type<tc>, window_params = [{transform_indices = @transform_0, window_bounds = array<i64: 16, 128>}, {transform_indices = @transform_1, window_bounds = array<i64: 16, 128>}, {transform_indices = @transform_2, window_bounds = array<i64: 1, 3, 128>}]} {
    %c0_i32 = arith.constant 0 : i32
    %0 = arith.cmpi eq, %arg1, %c0_i32 : i32
    %1 = arith.extui %0 : i1 to i32
    %c0_i32_0 = arith.constant 0 : i32
    %2 = arith.cmpi ne, %1, %c0_i32_0 : i32
    scf.if %2 {
      %cst_27 = arith.constant 0.000000e+00 : f32
      %50 = vector.broadcast %cst_27 : f32 to vector<1x3x128xf32>
      %c0_28 = arith.constant 0 : index
      %c0_29 = arith.constant 0 : index
      %c0_30 = arith.constant 0 : index
      %51 = vector.load %arg4[%c0_28, %c0_29, %c0_30] : memref<1x3x128xf32, #tpu.memory_space<vmem>>, vector<1x3x128xf32>
      tpu.vector_store %arg4[%c0_28, %c0_29, %c0_30], %50 {strides = array<i32>} : memref<1x3x128xf32, #tpu.memory_space<vmem>>, vector<1x3x128xf32>,
    } else {
    }
    %c0 = arith.constant 0 : index
    %c0_1 = arith.constant 0 : index
    %3 = vector.load %arg2[%c0, %c0_1] : memref<16x128xf32, #tpu.memory_space<vmem>>, vector<16x128xf32>
    %c0_2 = arith.constant 0 : index
    %c0_3 = arith.constant 0 : index
    %4 = vector.load %arg3[%c0_2, %c0_3] : memref<16x128xf32, #tpu.memory_space<vmem>>, vector<16x128xf32>
    %5 = math.absf %3 : vector<16x128xf32>
    %cst = arith.constant 0.000000e+00 : f32
    %6 = vector.broadcast %cst : f32 to vector<16x128xf32>
    %7 = arith.subf %6, %5 : vector<16x128xf32>
    %8 = math.exp %7 : vector<16x128xf32>
    %cst_4 = arith.constant 1.000000e+00 : f32
    %9 = vector.broadcast %cst_4 : f32 to vector<16x128xf32>
    %10 = arith.addf %9, %8 : vector<16x128xf32>
    %11 = tpu.reciprocal %10 : vector<16x128xf32> -> vector<16x128xf32>
    %cst_5 = arith.constant 0.000000e+00 : f32
    %12 = vector.broadcast %cst_5 : f32 to vector<16x128xf32>
    %13 = arith.cmpf oge, %3, %12 : vector<16x128xf32>
    %14 = arith.mulf %8, %11 : vector<16x128xf32>
    %15 = arith.select %13, %11, %14 : vector<16x128xi1>, vector<16x128xf32>
    %cst_6 = arith.constant 1.000000e+00 : f32
    %16 = vector.broadcast %cst_6 : f32 to vector<16x128xf32>
    %17 = arith.addf %16, %8 : vector<16x128xf32>
    %18 = math.log %17 : vector<16x128xf32>
    %cst_7 = arith.constant 0.000000e+00 : f32
    %19 = vector.broadcast %cst_7 : f32 to vector<16x128xf32>
    %20 = arith.maximumf %3, %19 : vector<16x128xf32>
    %21 = arith.addf %18, %20 : vector<16x128xf32>
    %22 = arith.mulf %3, %4 : vector<16x128xf32>
    %23 = arith.subf %21, %22 : vector<16x128xf32>
    %24 = arith.mulf %15, %4 : vector<16x128xf32>
    %25 = arith.addf %15, %4 : vector<16x128xf32>
    %c0_8 = arith.constant 0 : index
    %c0_9 = arith.constant 0 : index
    %c0_10 = arith.constant 0 : index
    %26 = vector.load %arg4[%c0_8, %c0_9, %c0_10] : memref<1x3x128xf32, #tpu.memory_space<vmem>>, vector<1x1x128xf32>
    %27 = vector.shape_cast %26 : vector<1x1x128xf32> to vector<1x128xf32>
    %cst_11 = arith.constant dense<0.000000e+00> : vector<128xf32>
    %28 = vector.multi_reduction <add>, %24, %cst_11 [0] : vector<16x128xf32> to vector<128xf32>
    %29 = vector.shape_cast %28 : vector<128xf32> to vector<1x128xf32>
    %30 = arith.addf %27, %29 : vector<1x128xf32>
    %c0_12 = arith.constant 0 : index
    %c0_13 = arith.constant 0 : index
    %c0_14 = arith.constant 0 : index
    %31 = vector.load %arg4[%c0_12, %c0_13, %c0_14] : memref<1x3x128xf32, #tpu.memory_space<vmem>>, vector<1x1x128xf32>
    %32 = vector.shape_cast %31 : vector<1x1x128xf32> to vector<1x128xf32>
    %33 = vector.shape_cast %30 : vector<1x128xf32> to vector<1x1x128xf32>
    tpu.vector_store %arg4[%c0_12, %c0_13, %c0_14], %33 {strides = array<i32>} : memref<1x3x128xf32, #tpu.memory_space<vmem>>, vector<1x1x128xf32>,
    %c0_15 = arith.constant 0 : index
    %c1 = arith.constant 1 : index
    %c0_16 = arith.constant 0 : index
    %34 = vector.load %arg4[%c0_15, %c1, %c0_16] : memref<1x3x128xf32, #tpu.memory_space<vmem>>, vector<1x1x128xf32>
    %35 = vector.shape_cast %34 : vector<1x1x128xf32> to vector<1x128xf32>
    %cst_17 = arith.constant dense<0.000000e+00> : vector<128xf32>
    %36 = vector.multi_reduction <add>, %25, %cst_17 [0] : vector<16x128xf32> to vector<128xf32>
    %37 = vector.shape_cast %36 : vector<128xf32> to vector<1x128xf32>
    %38 = arith.addf %35, %37 : vector<1x128xf32>
    %c0_18 = arith.constant 0 : index
    %c1_19 = arith.constant 1 : index
    %c0_20 = arith.constant 0 : index
    %39 = vector.load %arg4[%c0_18, %c1_19, %c0_20] : memref<1x3x128xf32, #tpu.memory_space<vmem>>, vector<1x1x128xf32>
    %40 = vector.shape_cast %39 : vector<1x1x128xf32> to vector<1x128xf32>
    %41 = vector.shape_cast %38 : vector<1x128xf32> to vector<1x1x128xf32>
    tpu.vector_store %arg4[%c0_18, %c1_19, %c0_20], %41 {strides = array<i32>} : memref<1x3x128xf32, #tpu.memory_space<vmem>>, vector<1x1x128xf32>,
    %c0_21 = arith.constant 0 : index
    %c2 = arith.constant 2 : index
    %c0_22 = arith.constant 0 : index
    %42 = vector.load %arg4[%c0_21, %c2, %c0_22] : memref<1x3x128xf32, #tpu.memory_space<vmem>>, vector<1x1x128xf32>
    %43 = vector.shape_cast %42 : vector<1x1x128xf32> to vector<1x128xf32>
    %cst_23 = arith.constant dense<0.000000e+00> : vector<128xf32>
    %44 = vector.multi_reduction <add>, %23, %cst_23 [0] : vector<16x128xf32> to vector<128xf32>
    %45 = vector.shape_cast %44 : vector<128xf32> to vector<1x128xf32>
    %46 = arith.addf %43, %45 : vector<1x128xf32>
    %c0_24 = arith.constant 0 : index
    %c2_25 = arith.constant 2 : index
    %c0_26 = arith.constant 0 : index
    %47 = vector.load %arg4[%c0_24, %c2_25, %c0_26] : memref<1x3x128xf32, #tpu.memory_space<vmem>>, vector<1x1x128xf32>
    %48 = vector.shape_cast %47 : vector<1x1x128xf32> to vector<1x128xf32>
    %49 = vector.shape_cast %46 : vector<1x128xf32> to vector<1x1x128xf32>
    tpu.vector_store %arg4[%c0_24, %c2_25, %c0_26], %49 {strides = array<i32>} : memref<1x3x128xf32, #tpu.memory_space<vmem>>, vector<1x1x128xf32>,
    return
  }
  func.func @transform_0(%arg0: i32, %arg1: i32) -> (i32, i32) {
    %c1_i32 = arith.constant 1 : i32
    %0 = arith.muli %arg0, %c1_i32 : i32
    %1 = arith.addi %0, %arg1 : i32
    %c0_i32 = arith.constant 0 : i32
    %c0_i32_0 = arith.constant 0 : i32
    return %1, %c0_i32 : i32, i32
  }
  func.func @transform_1(%arg0: i32, %arg1: i32) -> (i32, i32) {
    %c1_i32 = arith.constant 1 : i32
    %0 = arith.muli %arg0, %c1_i32 : i32
    %1 = arith.addi %0, %arg1 : i32
    %c0_i32 = arith.constant 0 : i32
    %c0_i32_0 = arith.constant 0 : i32
    return %1, %c0_i32 : i32, i32
  }
  func.func @transform_2(%arg0: i32, %arg1: i32) -> (i32, i32, i32) {
    %c0_i32 = arith.constant 0 : i32
    %c0_i32_0 = arith.constant 0 : i32
    %c0_i32_1 = arith.constant 0 : i32
    return %arg0, %c0_i32, %c0_i32_0 : i32, i32, i32
  }
}

</mosaic_0001>

<bundles_post_ra>
// kernel: combo_loss.1
= control target key start
LH: loop header
LB: loop body
LE: loop exit
PB: predicated region body
PF: predicated region fallthrough
CT: control target
= control target key end

     0   :  { %v157_v0 = vmov 0.0   ;;  %s206_s2 = inlined_call_operand.vmem [shape: f32[1,3,128], index: 2, kind: output, shape index: {}]   ;;  %s207_s0 = inlined_call_operand.vmem [shape: f32[16,128], index: 0, kind: input, shape index: {}]   ;;  %s208_s1 = inlined_call_operand.vmem [shape: f32[16,128], index: 1, kind: input, shape index: {}]  }
   0x1   :  { %59 = vst [vmem:[%s206_s2] sm:$0x7] %v157_v0  ;;  %v60_v1 = vld [vmem:[%s207_s0] sm:$0xff]  ;;  %v61_v2 = vld [vmem:[%s207_s0 + $0x8] sm:$0xff] }
   0x2   :  { %v64_v3 = vand.u32 2147483647, %v60_v1  ;;  %v65_v4 = vand.u32 2147483647, %v61_v2  ;;  %v62_v14 = vld [vmem:[%s208_s1] sm:$0xff]  ;;  %v63_v15 = vld [vmem:[%s208_s1 + $0x8] sm:$0xff] }
   0x3   :  { %vm76_vm0 = vcmp.ge.f32.partialorder %v60_v1, 0.0  ;;  %vm77_vm1 = vcmp.ge.f32.partialorder %v61_v2, 0.0  ;;  %v86_v18 = vmax.f32 %v60_v1, 0.0  ;;  %v87_v21 = vmax.f32 %v61_v2, 0.0 }
   0x4   :  { %v66_v5 = vsub.f32 0.0, %v64_v3  ;;  %v67_v6 = vsub.f32 0.0, %v65_v4  ;;  %v90_v25 = vmul.f32 %v62_v14, %v60_v1  ;;  %v91_v26 = vmul.f32 %v63_v15, %v61_v2 }
   0x6   :  { %v68_v7 = vmul.f32 1.442695, %v66_v5  ;;  %v70_v8 = vmul.f32 1.442695, %v67_v6 }
   0x8   :  { %145 = vpow2.f32 %v68_v7  ;;  %v98_v53 = vld [vmem:[%s206_s2] sm:$0x1]  ;;  %v108_v54 = vld [vmem:[%s206_s2 + $0x1] sm:$0x1]  ;;  %v118_v61 = vld [vmem:[%s206_s2 + $0x2] sm:$0x1] }
   0x9   :  { %147 = vpow2.f32 %v70_v8 }
  0x12   :  { %v146_v9 = vpop.eup %145 }
  0x13   :  { %v148_v10 = vpop.eup %147  ;;  %v72_v11 = vadd.f32 1.0, %v146_v9 }
  0x14   :  { %v73_v12 = vadd.f32 1.0, %v148_v10 }
  0x15   :  { %149 = vrcp.f32 %v72_v11 }
  0x16   :  { %151 = vrcp.f32 %v73_v12 }
  0x17   :  { %153 = vlog2.f32 %v72_v11 }
  0x18   :  { %155 = vlog2.f32 %v73_v12 }
  0x1f   :  { %v150_v13 = vpop.eup %149 }
  0x20   :  { %v152_v16 = vpop.eup %151  ;;  %v78_v17 = vmul.f32 %v150_v13, %v146_v9 }
  0x21   :  { %v154_v19 = vpop.eup %153  ;;  %v79_v20 = vmul.f32 %v152_v16, %v148_v10 }
  0x22   :  { %v156_v22 = vpop.eup %155  ;;  %v80_v23 = vsel %vm76_vm0, %v150_v13, %v78_v17  ;;  %v83_v24 = vmul.f32 0.6931472, %v154_v19 }
  0x23   :  { %v81_v27 = vsel %vm77_vm1, %v152_v16, %v79_v20  ;;  %v94_v28 = vmul.f32 %v80_v23, %v62_v14  ;;  %v96_v29 = vadd.f32 %v80_v23, %v62_v14  ;;  %v85_v30 = vmul.f32 0.6931472, %v156_v22 }
  0x24   :  { %v95_v31 = vmul.f32 %v81_v27, %v63_v15  ;;  %v97_v32 = vadd.f32 %v81_v27, %v63_v15  ;;  %v88_v33 = vadd.f32 %v86_v18, %v83_v24 }
  0x25   :  { %v89_v34 = vadd.f32 %v87_v21, %v85_v30 }
  0x26   :  { %v99_v35 = vadd.f32 %v95_v31, %v94_v28  ;;  %v109_v36 = vadd.f32 %v97_v32, %v96_v29  ;;  %v92_v37 = vsub.f32 %v88_v33, %v90_v25 }
  0x27   :  { %v93_v38 = vsub.f32 %v89_v34, %v91_v26 }
  0x28   :  { %v100_v39 = vrot.slane %v99_v35, 4  ;;  %v110_v40 = vrot.slane %v109_v36, 4 }
  0x29   :  { %v119_v41 = vadd.f32 %v93_v38, %v92_v37 }
  0x2a   :  { %v101_v42 = vadd.f32 %v100_v39, %v99_v35  ;;  %v111_v43 = vadd.f32 %v110_v40, %v109_v36 }
  0x2b   :  { %v120_v44 = vrot.slane %v119_v41, 4 }
  0x2c   :  { %v102_v45 = vrot.slane %v101_v42, 2  ;;  %v112_v46 = vrot.slane %v111_v43, 2 }
  0x2d   :  { %v121_v47 = vadd.f32 %v120_v44, %v119_v41 }
  0x2e   :  { %v103_v48 = vadd.f32 %v102_v45, %v101_v42  ;;  %v113_v49 = vadd.f32 %v112_v46, %v111_v43 }
  0x2f   :  { %v122_v50 = vrot.slane %v121_v47, 2 }
  0x30   :  { %v104_v51 = vrot.slane %v103_v48, 1  ;;  %v114_v52 = vrot.slane %v113_v49, 1 }
  0x31   :  { %v123_v55 = vadd.f32 %v122_v50, %v121_v47 }
  0x32   :  { %v105_v56 = vadd.f32 %v104_v51, %v103_v48  ;;  %v115_v57 = vadd.f32 %v114_v52, %v113_v49 }
  0x33   :  { %v124_v58 = vrot.slane %v123_v55, 1 }
  0x34   :  { %v106_v59 = vadd.f32 %v105_v56, %v98_v53  ;;  %v116_v60 = vadd.f32 %v115_v57, %v108_v54 }
  0x35   :  { %v125_v62 = vadd.f32 %v124_v58, %v123_v55 }
  0x36   :  { %107 = vst [vmem:[%s206_s2] sm:$0x1] %v106_v59  ;;  %117 = vst [vmem:[%s206_s2 + $0x1] sm:$0x1] %v116_v60 }
  0x37   :  { %v126_v63 = vadd.f32 %v125_v62, %v118_v61 }
  0x39   :  { %127 = vst [vmem:[%s206_s2 + $0x2] sm:$0x1] %v126_v63 }

</bundles_post_ra>
